<compile_context>
chip_gen: v5e
topology: v5e:2x2
jax: 0.10.0
libtpu: 0.0.40
codegen_flags: <defaults>
</compile_context>

<pallas_src>
import jax
import jax.numpy as jnp
from jax.experimental import pallas as pl
from jax.experimental.pallas import tpu as pltpu

H1 = 256          # fc1 output width
H2 = 128          # fc2 output width
MAX_TM = 1024     # max batch tile (multiple of 256; streamed bufs + intermediates << VMEM)


def _pick_tm(batch):
    """Largest useful batch tile: multiple of 256 up to MAX_TM, else round-up-to-8."""
    if batch >= MAX_TM:
        return MAX_TM
    if batch >= 256:
        return pl.cdiv(batch, 256) * 256
    return max(8, pl.cdiv(batch, 8) * 8)


def mlp_kernel(x_ref, w1_ref, b1_ref, w2_ref, b2_ref, w3_ref, b3_ref, o_ref):
    # fc1 + ReLU  (bf16 MXU operands streamed from HBM, f32 accumulation)
    h1 = jnp.dot(x_ref[...], w1_ref[...], preferred_element_type=jnp.float32) + b1_ref[...]
    h1 = jnp.maximum(h1, 0.0).astype(jnp.bfloat16)

    # fc2 + ReLU
    h2 = jnp.dot(h1, w2_ref[...], preferred_element_type=jnp.float32) + b2_ref[...]
    h2 = jnp.maximum(h2, 0.0).astype(jnp.bfloat16)

    # fc3 over the real class lanes only (no padded logits)
    z = jnp.dot(h2, w3_ref[...], preferred_element_type=jnp.float32) + b3_ref[...]

    # numerically stable softmax over dim=1; divide via EUP approx reciprocal
    m = jnp.max(z, axis=1, keepdims=True)
    e = jnp.exp(z - m)
    inv = pl.reciprocal(jnp.sum(e, axis=1, keepdims=True), approx=True)
    o_ref[...] = e * inv


def feedforward_nn(x, w1, b1, w2, b2, w3, b3):
    """x: [B, input_size] f32. Weights are [in, out] (== W.T vs PyTorch), biases [1, out]."""
    B, in_size = x.shape
    out_size = w3.shape[1]

    tm = _pick_tm(B)
    B_pad = pl.cdiv(B, tm) * tm

    # --- wrapper-side prep: pad batch only, cast streamed x to bf16 (no lane padding) ----
    x_p = jnp.pad(x, ((0, B_pad - B), (0, 0))).astype(jnp.bfloat16)   # [B_pad, in_size]
    w1_p = w1.astype(jnp.bfloat16)                                     # [in_size, 256]
    b1_p = b1.astype(jnp.float32)                                      # [1, 256]
    w2_p = w2.astype(jnp.bfloat16)                                     # [256, 128]
    b2_p = b2.astype(jnp.float32)                                      # [1, 128]
    w3_p = w3.astype(jnp.bfloat16)                                     # [128, out_size]
    b3_p = b3.astype(jnp.float32)                                      # [1, out_size]

    grid = (B_pad // tm,)
    const = lambda i: (0, 0)  # weights/biases resident across the whole grid

    weight_bytes = (w1_p.size + w2_p.size + w3_p.size) * 2 \
                 + (b1_p.size + b2_p.size + b3_p.size) * 4
    cost = pl.CostEstimate(
        flops=2 * B_pad * (in_size * H1 + H1 * H2 + H2 * out_size),
        transcendentals=B_pad * (out_size + 1),                 # exp per logit + recip per row
        bytes_accessed=x_p.size * 2 + B_pad * out_size * 4 + weight_bytes,
    )

    out = pl.pallas_call(
        mlp_kernel,
        out_shape=jax.ShapeDtypeStruct((B_pad, out_size), jnp.float32),
        grid_spec=pltpu.PrefetchScalarGridSpec(
            num_scalar_prefetch=0,
            grid=grid,
            in_specs=[
                pl.BlockSpec((tm, in_size), lambda i: (i, 0)),   # x tile streams over batch
                pl.BlockSpec((in_size, H1), const),              # w1
                pl.BlockSpec((1, H1), const),                    # b1
                pl.BlockSpec((H1, H2), const),                   # w2
                pl.BlockSpec((1, H2), const),                    # b2
                pl.BlockSpec((H2, out_size), const),             # w3
                pl.BlockSpec((1, out_size), const),              # b3
            ],
            out_specs=pl.BlockSpec((tm, out_size), lambda i: (i, 0)),
        ),
        compiler_params=pltpu.CompilerParams(
            dimension_semantics=("parallel",),   # shard batch tiles across TCs on v7x
        ),
        cost_estimate=cost,
    )(x_p, w1_p, b1_p, w2_p, b2_p, w3_p, b3_p)

    # drop padded batch rows (class lanes are already exact)
    return out[:B, :]


def init_params(key, input_size=5, output_size=2):
    """Deterministic init mimicking nn.Linear (uniform +/- 1/sqrt(fan_in))."""
    dims = [(input_size, H1), (H1, H2), (H2, output_size)]
    params = []
    for i, (fan_in, fan_out) in enumerate(dims):
        kw, kb = jax.random.split(jax.random.fold_in(key, i))
        bound = 1.0 / (fan_in ** 0.5)
        # stored as [in, out] == W.T relative to PyTorch's [out, in]
        w = jax.random.uniform(kw, (fan_in, fan_out), jnp.float32, -bound, bound)
        b = jax.random.uniform(kb, (1, fan_out), jnp.float32, -bound, bound)
        params += [w, b]
    return params


def _ref_same_precision(x, w1, b1, w2, b2, w3, b3):
    """Reference using the same bf16-operand / f32-accumulate recipe as the kernel."""
    bf = jnp.bfloat16
    h1 = jnp.maximum(jnp.dot(x.astype(bf), w1.astype(bf),
                             preferred_element_type=jnp.float32) + b1, 0.0)
    h2 = jnp.maximum(jnp.dot(h1.astype(bf), w2.astype(bf),
                             preferred_element_type=jnp.float32) + b2, 0.0)
    z = jnp.dot(h2.astype(bf), w3.astype(bf), preferred_element_type=jnp.float32) + b3
    return jax.nn.softmax(z, axis=1)


if __name__ == "__main__":
    # TODO(synk): training (CrossEntropyLoss + Adam) and predict/argmax are not part of the
    # forward pass and are intentionally not implemented as kernels.
    key = jax.random.PRNGKey(0)
    kx, kp = jax.random.split(key)

    batch, input_size, output_size = 8, 5, 2
    x = jax.random.normal(kx, (batch, input_size), jnp.float32)
    w1, b1, w2, b2, w3, b3 = init_params(kp, input_size, output_size)

    out = feedforward_nn(x, w1, b1, w2, b2, w3, b3)
    out = jax.block_until_ready(out)
    assert out.shape == (batch, output_size)

    # reference at matching precision (bf16 matmul operands, f32 accumulation)
    ref_bf16 = _ref_same_precision(x, w1, b1, w2, b2, w3, b3)
    assert jnp.allclose(out, ref_bf16, atol=1e-2), "mismatch vs bf16-precision reference"

    # sanity vs full-f32 reference (looser: bf16 operands + approx reciprocal)
    h1 = jnp.maximum(x @ w1 + b1, 0.0)
    h2 = jnp.maximum(h1 @ w2 + b2, 0.0)
    ref_f32 = jax.nn.softmax(h2 @ w3 + b3, axis=1)
    assert jnp.allclose(out, ref_f32, atol=5e-2), "mismatch vs f32 reference"

    assert jnp.allclose(jnp.sum(out, axis=1), 1.0, atol=1e-2)

    print("KERNEL_OK")
</pallas_src>

<mosaic_0001>
module attributes {stable_mosaic.version = 11 : i64} {
  func.func @mlp_kernel(%arg0: i32, %arg1: memref<8x5xbf16, #tpu.memory_space<vmem>>, %arg2: memref<5x256xbf16, #tpu.memory_space<vmem>>, %arg3: memref<1x256xf32, #tpu.memory_space<vmem>>, %arg4: memref<256x128xbf16, #tpu.memory_space<vmem>>, %arg5: memref<1x128xf32, #tpu.memory_space<vmem>>, %arg6: memref<128x2xbf16, #tpu.memory_space<vmem>>, %arg7: memref<1x2xf32, #tpu.memory_space<vmem>>, %arg8: memref<8x2xf32, #tpu.memory_space<vmem>>) attributes {dimension_semantics = [#tpu.dimension_semantics<parallel>], iteration_bounds = array<i64: 1>, scalar_prefetch = 0 : i64, scratch_operands = 0 : i64, tpu.core_type = #tpu.core_type<tc>, window_params = [{transform_indices = @transform_0, window_bounds = array<i64: 8, 5>}, {pipeline_mode = #tpu.pipeline_mode<synchronous>, transform_indices = @transform_1, window_bounds = array<i64: 5, 256>}, {pipeline_mode = #tpu.pipeline_mode<synchronous>, transform_indices = @transform_2, window_bounds = array<i64: 1, 256>}, {pipeline_mode = #tpu.pipeline_mode<synchronous>, transform_indices = @transform_3, window_bounds = array<i64: 256, 128>}, {pipeline_mode = #tpu.pipeline_mode<synchronous>, transform_indices = @transform_4, window_bounds = array<i64: 1, 128>}, {pipeline_mode = #tpu.pipeline_mode<synchronous>, transform_indices = @transform_5, window_bounds = array<i64: 128, 2>}, {pipeline_mode = #tpu.pipeline_mode<synchronous>, transform_indices = @transform_6, window_bounds = array<i64: 1, 2>}, {transform_indices = @transform_7, window_bounds = array<i64: 8, 2>}]} {
    %c0 = arith.constant 0 : index
    %c0_0 = arith.constant 0 : index
    %0 = vector.load %arg1[%c0, %c0_0] : memref<8x5xbf16, #tpu.memory_space<vmem>>, vector<8x5xbf16>
    %c0_1 = arith.constant 0 : index
    %c0_2 = arith.constant 0 : index
    %1 = vector.load %arg2[%c0_1, %c0_2] : memref<5x256xbf16, #tpu.memory_space<vmem>>, vector<5x256xbf16>
    %cst = arith.constant dense<0.000000e+00> : vector<8x256xf32>
    %2 = tpu.matmul %0, %1, %cst {dimension_numbers = #tpu.dot_dimension_numbers<[1], [0], [0], [1], [0, 0, 1, 1], [], []>} : vector<8x5xbf16>, vector<5x256xbf16>, vector<8x256xf32> -> vector<8x256xf32>
    %c0_3 = arith.constant 0 : index
    %c0_4 = arith.constant 0 : index
    %3 = vector.load %arg3[%c0_3, %c0_4] : memref<1x256xf32, #tpu.memory_space<vmem>>, vector<1x256xf32>
    %4 = vector.broadcast %3 : vector<1x256xf32> to vector<8x256xf32>
    %5 = arith.addf %2, %4 : vector<8x256xf32>
    %cst_5 = arith.constant 0.000000e+00 : f32
    %6 = vector.broadcast %cst_5 : f32 to vector<8x256xf32>
    %7 = arith.maximumf %5, %6 : vector<8x256xf32>
    %8 = arith.truncf %7 : vector<8x256xf32> to vector<8x256xbf16>
    %c0_6 = arith.constant 0 : index
    %c0_7 = arith.constant 0 : index
    %9 = vector.load %arg4[%c0_6, %c0_7] : memref<256x128xbf16, #tpu.memory_space<vmem>>, vector<256x128xbf16>
    %cst_8 = arith.constant dense<0.000000e+00> : vector<8x128xf32>
    %10 = tpu.matmul %8, %9, %cst_8 {dimension_numbers = #tpu.dot_dimension_numbers<[1], [0], [0], [1], [0, 0, 1, 1], [], []>} : vector<8x256xbf16>, vector<256x128xbf16>, vector<8x128xf32> -> vector<8x128xf32>
    %c0_9 = arith.constant 0 : index
    %c0_10 = arith.constant 0 : index
    %11 = vector.load %arg5[%c0_9, %c0_10] : memref<1x128xf32, #tpu.memory_space<vmem>>, vector<1x128xf32>
    %12 = vector.broadcast %11 : vector<1x128xf32> to vector<8x128xf32>
    %13 = arith.addf %10, %12 : vector<8x128xf32>
    %cst_11 = arith.constant 0.000000e+00 : f32
    %14 = vector.broadcast %cst_11 : f32 to vector<8x128xf32>
    %15 = arith.maximumf %13, %14 : vector<8x128xf32>
    %16 = arith.truncf %15 : vector<8x128xf32> to vector<8x128xbf16>
    %c0_12 = arith.constant 0 : index
    %c0_13 = arith.constant 0 : index
    %17 = vector.load %arg6[%c0_12, %c0_13] : memref<128x2xbf16, #tpu.memory_space<vmem>>, vector<128x2xbf16>
    %cst_14 = arith.constant dense<0.000000e+00> : vector<8x2xf32>
    %18 = tpu.matmul %16, %17, %cst_14 {dimension_numbers = #tpu.dot_dimension_numbers<[1], [0], [0], [1], [0, 0, 1, 1], [], []>} : vector<8x128xbf16>, vector<128x2xbf16>, vector<8x2xf32> -> vector<8x2xf32>
    %c0_15 = arith.constant 0 : index
    %c0_16 = arith.constant 0 : index
    %19 = vector.load %arg7[%c0_15, %c0_16] : memref<1x2xf32, #tpu.memory_space<vmem>>, vector<1x2xf32>
    %20 = vector.broadcast %19 : vector<1x2xf32> to vector<8x2xf32>
    %21 = arith.addf %18, %20 : vector<8x2xf32>
    %cst_17 = arith.constant dense<0xFF800000> : vector<8xf32>
    %22 = vector.multi_reduction <maximumf>, %21, %cst_17 [1] : vector<8x2xf32> to vector<8xf32>
    %23 = vector.shape_cast %22 : vector<8xf32> to vector<8x1xf32>
    %24 = vector.broadcast %23 : vector<8x1xf32> to vector<8x2xf32>
    %25 = arith.subf %21, %24 : vector<8x2xf32>
    %26 = math.exp %25 : vector<8x2xf32>
    %cst_18 = arith.constant dense<0.000000e+00> : vector<8xf32>
    %27 = vector.multi_reduction <add>, %26, %cst_18 [1] : vector<8x2xf32> to vector<8xf32>
    %28 = vector.shape_cast %27 : vector<8xf32> to vector<8x1xf32>
    %29 = tpu.reciprocal %28 {approx = true} : vector<8x1xf32> -> vector<8x1xf32>
    %30 = vector.broadcast %29 : vector<8x1xf32> to vector<8x2xf32>
    %31 = arith.mulf %26, %30 : vector<8x2xf32>
    %c0_19 = arith.constant 0 : index
    %c0_20 = arith.constant 0 : index
    %32 = vector.load %arg8[%c0_19, %c0_20] : memref<8x2xf32, #tpu.memory_space<vmem>>, vector<8x2xf32>
    tpu.vector_store %arg8[%c0_19, %c0_20], %31 {strides = array<i32>} : memref<8x2xf32, #tpu.memory_space<vmem>>, vector<8x2xf32>,
    return
  }
  func.func @transform_0(%arg0: i32) -> (i32, i32) {
    %c0_i32 = arith.constant 0 : i32
    %c0_i32_0 = arith.constant 0 : i32
    return %arg0, %c0_i32 : i32, i32
  }
  func.func @transform_1(%arg0: i32) -> (i32, i32) {
    %c0_i32 = arith.constant 0 : i32
    %c0_i32_0 = arith.constant 0 : i32
    %c0_i32_1 = arith.constant 0 : i32
    return %c0_i32, %c0_i32_0 : i32, i32
  }
  func.func @transform_2(%arg0: i32) -> (i32, i32) {
    %c0_i32 = arith.constant 0 : i32
    %c0_i32_0 = arith.constant 0 : i32
    %c0_i32_1 = arith.constant 0 : i32
    return %c0_i32, %c0_i32_0 : i32, i32
  }
  func.func @transform_3(%arg0: i32) -> (i32, i32) {
    %c0_i32 = arith.constant 0 : i32
    %c0_i32_0 = arith.constant 0 : i32
    %c0_i32_1 = arith.constant 0 : i32
    return %c0_i32, %c0_i32_0 : i32, i32
  }
  func.func @transform_4(%arg0: i32) -> (i32, i32) {
    %c0_i32 = arith.constant 0 : i32
    %c0_i32_0 = arith.constant 0 : i32
    %c0_i32_1 = arith.constant 0 : i32
    return %c0_i32, %c0_i32_0 : i32, i32
  }
  func.func @transform_5(%arg0: i32) -> (i32, i32) {
    %c0_i32 = arith.constant 0 : i32
    %c0_i32_0 = arith.constant 0 : i32
    %c0_i32_1 = arith.constant 0 : i32
    return %c0_i32, %c0_i32_0 : i32, i32
  }
  func.func @transform_6(%arg0: i32) -> (i32, i32) {
    %c0_i32 = arith.constant 0 : i32
    %c0_i32_0 = arith.constant 0 : i32
    %c0_i32_1 = arith.constant 0 : i32
    return %c0_i32, %c0_i32_0 : i32, i32
  }
  func.func @transform_7(%arg0: i32) -> (i32, i32) {
    %c0_i32 = arith.constant 0 : i32
    %c0_i32_0 = arith.constant 0 : i32
    return %arg0, %c0_i32 : i32, i32
  }
}

</mosaic_0001>

<bundles_post_ra>
// kernel: tpu_custom_call.1
= control target key start
LH: loop header
LB: loop body
LE: loop exit
PB: predicated region body
PF: predicated region fallthrough
CT: control target
= control target key end

     0   :  { %12 = vsyncpa [#allocation3], 0  ;;  %s517_s27 = smov [#allocation2]   ;;  %s518_s29 = smov 64   ;;  %s609_s0 = inlined_call_operand.vmem [shape: bf16[8,5], index: 0, kind: input, shape index: {}]   ;;  %s610_s1 = inlined_call_operand.vmem [shape: bf16[5,256], index: 1, kind: input, shape index: {}]   ;;  %s611_s2 = inlined_call_operand.vmem [shape: f32[1,256], index: 2, kind: input, shape index: {}]   ;;  %s612_s3 = inlined_call_operand.hbm [shape: bf16[256,128], index: 3, kind: input, shape index: {}]   ;;  %s613_s4 = inlined_call_operand.vmem [shape: f32[1,128], index: 4, kind: input, shape index: {}]   ;;  %s614_s5 = inlined_call_operand.vmem [shape: bf16[128,2], index: 5, kind: input, shape index: {}]   ;;  %s615_s6 = inlined_call_operand.vmem [shape: f32[1,2], index: 6, kind: input, shape index: {}]   ;;  %s616_s7 = inlined_call_operand.vmem [shape: f32[8,2], index: 7, kind: output, shape index: {}]  }
   0x1   :  { %s23_s26 = sshll.u32 %s612_s3, 4  ;;  %s25_s28 = sshll.u32 %s517_s27, 4  ;;  %s24_s26 = int_to_ptr.hbm [resolvable:$true] %s23_s26  ;;  %s26_s28 = int_to_ptr.vmem [resolvable:$true] %s25_s28 }
   0x2   :  { %s519_s30 = smov 4  }
   0x3   :  { %31 = dma.hbm_to_vmem [thread:$0]  %s24_s26, 2048, %s26_s28, [#allocation3], %s518_s29, %s518_s29, %s519_s30  }
   0x4   :  { %515 = dma.done.wait [#allocation3], 2048  }
   0x5   :  { %516 = vsyncadd [#allocation3], 4294965248  ;;  %vm60_vm0 = vcmask 1041408   ;;  %vm61_vm1 = vcmask 1042432   ;;  %v520_v0 = vmov 65535   ;;  %v464_v3 = vld [vmem:[#allocation2 + $0x38] sm:$0xff] }
   0x6   :  { %v62_v1 = vsel %vm60_vm0, 4294967295, %v520_v0  ;;  %v44_v2 = vld [vmem:[%s610_s1] sm:$0x77]  ;;  %232 = vmatpush.bf16.msra.mxu2 %v464_v3  ;;  %v463_v7 = vld [vmem:[#allocation2 + $0x30] sm:$0xff]  ;;  %v472_v8 = vld [vmem:[#allocation2 + $0x78] sm:$0xff]  ;;  %vm56_vm2 = vcmask 39936  }
   0x7   :  { %v52_v4 = vunpack.c.l.b16 %v44_v2  ;;  %v53_v5 = vunpack.c.h.b16 %v44_v2  ;;  %v63_v6 = vsel %vm61_vm1, %v62_v1, 0  ;;  %245 = vmatpush.bf16.msra.mxu3 %v472_v8  ;;  %v471_v11 = vld [vmem:[#allocation2 + $0x70] sm:$0xff]  ;;  %v462_v14 = vld [vmem:[#allocation2 + $0x28] sm:$0xff]  ;;  %v43_v15 = vld [vmem:[%s609_s0] sm:$0xf]  ;;  %vm341_vm3 = vcmask 15360  }
   0x8   :  { %v461_v16 = vld [vmem:[#allocation2 + $0x20] sm:$0xff]  ;;  %v460_v17 = vld [vmem:[#allocation2 + $0x18] sm:$0xff]  ;;  %v459_v18 = vld [vmem:[#allocation2 + $0x10] sm:$0xff] }
   0x9   :  { %v54_v9 = vpack.c.b16 %v52_v4, %v52_v4  ;;  %v55_v10 = vpack.c.b16 %v53_v5, %v53_v5  ;;  %v458_v19 = vld [vmem:[#allocation2 + $0x8] sm:$0xff]  ;;  %v457_v21 = vld [vmem:[#allocation2] sm:$0xff]  ;;  %v468_v23 = vld [vmem:[#allocation2 + $0x58] sm:$0xff] }
   0xa   :  { %233 = vmatpush.bf16.msra.mxu2 %v463_v7  ;;  %v470_v20 = vld [vmem:[#allocation2 + $0x68] sm:$0xff]  ;;  %v469_v22 = vld [vmem:[#allocation2 + $0x60] sm:$0xff]  ;;  %v467_v24 = vld [vmem:[#allocation2 + $0x50] sm:$0xff] }
   0xb   :  { %v65_v12 = vand.u32 %v63_v6, %v54_v9  ;;  %v68_v13 = vand.u32 %v63_v6, %v55_v10  ;;  %246 = vmatpush.bf16.msra.mxu3 %v471_v11  ;;  %v466_v25 = vld [vmem:[#allocation2 + $0x48] sm:$0xff]  ;;  %v465_v26 = vld [vmem:[#allocation2 + $0x40] sm:$0xff]  ;;  %v480_v27 = vld [vmem:[%s614_s5 + $0x38] sm:$0xff] }
   0xc   :  { %v45_v28 = vld [vmem:[%s611_s2] sm:$0x3]  ;;  %328 = vmatpush.bf16.msra.mxu0 %v480_v27  ;;  %v479_v29 = vld [vmem:[%s614_s5 + $0x30] sm:$0xff]  ;;  %v478_v42 = vld [vmem:[%s614_s5 + $0x28] sm:$0xff] }
   0xd   :  { %77 = vmatpush.bf16.msra.mxu1 %v65_v12  ;;  %v47_v30 = vperm.slane %v45_v28, 0  ;;  %v48_v36 = vperm.slane %v45_v28, 1  ;;  %v477_v43 = vld [vmem:[%s614_s5 + $0x20] sm:$0xff]  ;;  %v476_v44 = vld [vmem:[%s614_s5 + $0x18] sm:$0xff]  ;;  %v475_v45 = vld [vmem:[%s614_s5 + $0x10] sm:$0xff] }
   0xe   :  { %234 = vmatpush.bf16.msra.mxu2 %v462_v14  ;;  %v474_v46 = vld [vmem:[%s614_s5 + $0x8] sm:$0xff]  ;;  %v473_v47 = vld [vmem:[%s614_s5] sm:$0xff] }
   0xf   :  { %247 = vmatpush.bf16.msra.mxu3 %v470_v20  ;;  %v485_v50 = vld [vmem:[%s613_s4] ss:$0 sm:$0xff] }
  0x10   :  { %359 = vmatmul.msk.bf16.vlgmr.msra.gmra.mxu1 %vm56_vm2, %v43_v15  ;;  %329 = vmatpush.bf16.msra.mxu0 %v479_v29  ;;  %v486_v57 = vld [vmem:[%s615_s6] ss:$0 sm:$0xff] }
  0x11   :  { %90 = vmatpush.bf16.msrb.mxu1 %v68_v13 }
  0x12   :  { %235 = vmatpush.bf16.msra.mxu2 %v461_v16 }
  0x13   :  { %248 = vmatpush.bf16.msra.mxu3 %v469_v22 }
  0x14   :  { %330 = vmatpush.bf16.msra.mxu0 %v478_v42 }
  0x16   :  { %236 = vmatpush.bf16.msra.mxu2 %v460_v17 }
  0x17   :  { %249 = vmatpush.bf16.msra.mxu3 %v468_v23 }
  0x18   :  { %331 = vmatpush.bf16.msra.mxu0 %v477_v43 }
  0x1a   :  { %237 = vmatpush.bf16.msra.mxu2 %v459_v18 }
  0x1b   :  { %250 = vmatpush.bf16.msra.mxu3 %v467_v24 }
  0x1c   :  { %332 = vmatpush.bf16.msra.mxu0 %v476_v44 }
  0x1e   :  { %238 = vmatpush.bf16.msra.mxu2 %v458_v19 }
  0x1f   :  { %251 = vmatpush.bf16.msra.mxu3 %v466_v25 }
  0x20   :  { %360 = vmatmul.msk.bf16.vlgmr.msrb.gmra.mxu1 %vm56_vm2, %v43_v15  ;;  %333 = vmatpush.bf16.msra.mxu0 %v475_v45 }
  0x22   :  { %239 = vmatpush.bf16.msra.mxu2 %v457_v21 }
  0x23   :  { %252 = vmatpush.bf16.msra.mxu3 %v465_v26 }
  0x24   :  { %334 = vmatpush.bf16.msra.mxu0 %v474_v46 }
  0x28   :  { %335 = vmatpush.bf16.msra.mxu0 %v473_v47 }
  0x8d   :  { %v79_v31 = vpop.f32.mrf.mxu1 }
  0x8e   :  { %v80_v32 = vadd.f32 %v79_v31, %v47_v30 }
  0x90   :  { %v96_v33 = vmax.f32 %v80_v32, 0.0 }
  0x92   :  { %v98_v34 = vpack.c.bf16 %v96_v33, %v96_v33 }
  0x94   :  { %240 = vmatmul.bf16.vlgmr.msra.gmra.mxu2 %v98_v34 }
  0x95   :  { %v81_v35 = vpop.f32.mrf.mxu1 }
  0x9d   :  { %v92_v37 = vpop.f32.mrf.mxu1 }
  0x9e   :  { %v93_v38 = vadd.f32 %v92_v37, %v48_v36 }
  0xa0   :  { %v97_v39 = vmax.f32 %v93_v38, 0.0 }
  0xa2   :  { %v99_v40 = vpack.c.bf16 %v97_v39, %v97_v39 }
  0xa4   :  { %253 = vmatmul.bf16.vlgmr.msra.gmra.mxu3 %v99_v40 }
  0xa5   :  { %v94_v41 = vpop.f32.mrf.mxu1 }
 0x117   :  { %v241_v48 = vpop.f32.mrf.mxu2 }
 0x118   :  { %v242_v51 = vadd.f32 %v485_v50, %v241_v48 }
 0x11f   :  { %v243_v49 = vpop.f32.mrf.mxu2 }
 0x127   :  { %v254_v52 = vpop.f32.mrf.mxu3 }
 0x128   :  { %v255_v53 = vadd.f32 %v254_v52, %v242_v51 }
 0x12a   :  { %v258_v54 = vmax.f32 %v255_v53, 0.0 }
 0x12c   :  { %v259_v55 = vpack.c.bf16 %v258_v54, %v258_v54 }
 0x12e   :  { %336 = vmatmul.bf16.vlgmr.msra.gmra.mxu0 %v259_v55 }
 0x12f   :  { %v256_v56 = vpop.f32.mrf.mxu3 }
 0x1ab   :  { %v337_v58 = vpop.f32.mrf.mxu0 }
 0x1ac   :  { %v338_v59 = vadd.f32 %v486_v57, %v337_v58 }
 0x1ae   :  { %v342_v60 = vsel %vm341_vm3, %v338_v59, -inf }
 0x1af   :  { %343 = vmax.xlane.f32.xlu0 %v342_v60 }
 0x1b3   :  { %v339_v61 = vpop.f32.mrf.mxu0 }
 0x222   :  { %v344_v62 = vpop.xlane.xlu0 %343 }
 0x223   :  { %v345_v63 = vsub.f32 %v338_v59, %v344_v62 }
 0x225   :  { %v346_v0 = vmul.f32 1.442695, %v345_v63 }
 0x227   :  { %487 = vpow2.f32 %v346_v0 }
 0x22d   :  { %v488_v1 = vpop.eup %487 }
 0x22e   :  { %v348_v2 = vsel %vm341_vm3, %v488_v1, 0.0 }
 0x22f   :  { %349 = vadd.xlane.f32.xlu0 %v348_v2 }
 0x2a2   :  { %v350_v3 = vpop.xlane.xlu0 %349 }
 0x2a3   :  { %489 = vrcp.f32 %v350_v3 }
 0x2a9   :  { %v490_v4 = vpop.eup %489 }
 0x2aa   :  { %v352_v5 = vmul.f32 %v490_v4, %v488_v1 }
 0x2ac   :  { %353 = vst.msk [vmem:[%s616_s7] sm:$0xff] %vm341_vm3, %v352_v5 }
 0x2ad   :  { %358 = vsyncpa [#allocation3], 1 }

</bundles_post_ra>
